<compile_context>
chip_gen: v6e
topology: v6e:2x2x1
jax: 0.10.0
libtpu: 0.0.40
codegen_flags: <defaults>
</compile_context>

<pallas_src>
import functools

import jax
import jax.numpy as jnp
from jax.experimental import pallas as pl
from jax.experimental.pallas import tpu as pltpu

EPS = 1e-5


def _adain_kernel(style_ref, x_ref, o_ref):
    # style_ref: SMEM (2,) f32 -> [style_mean, style_std]
    # x_ref:     VMEM (TN, D) tile of patch features
    s_mean = style_ref[0]
    s_std = style_ref[1]

    x = x_ref[...].astype(jnp.float32)
    d = x.shape[1]

    # Two-pass centered row statistics (numerically robust; the extra VPU/XLU
    # pass over VMEM-resident data is hidden under the HBM DMA).
    mean = jnp.sum(x, axis=1, keepdims=True) * (1.0 / d)
    centered = x - mean
    # Unbiased variance (torch.std default, correction=1); guard d == 1.
    denom = max(d - 1, 1)  # TODO(synk): torch yields NaN for d==1; we clamp.
    var = jnp.sum(centered * centered, axis=1, keepdims=True) * (1.0 / denom)
    std = jnp.sqrt(var) + EPS

    # Fused per-row affine: out = centered * (style_std / std) + style_mean.
    row_scale = s_std / std
    o_ref[...] = (centered * row_scale + s_mean).astype(o_ref.dtype)


def _min_sublane(dtype):
    itemsize = jnp.dtype(dtype).itemsize
    if itemsize >= 4:
        return 8
    if itemsize == 2:
        return 16
    return 32


def _round_up(x, m):
    return ((x + m - 1) // m) * m


def _choose_tile_n(n, d, dtype, target_bytes=4 << 20):
    """Pick a row-tile.

    Budget assumes f32 compute temporaries (4 B/elem) regardless of the input
    itemsize, targets ~4 MiB per tile, keeps a ~1 MiB floor, and aims for at
    least ~8 total grid steps so both v7x TensorCores get a pipelined stream.
    """
    min_sub = _min_sublane(dtype)
    bytes_per_row = max(1, d) * 4  # f32 compute working set per row
    cap = max(min_sub, (target_bytes // bytes_per_row) // min_sub * min_sub)
    floor_rows = max(min_sub, ((1 << 20) // bytes_per_row) // min_sub * min_sub)
    eighth = _round_up(pl.cdiv(n, 8), min_sub)
    tile = min(cap, max(floor_rows, eighth))
    # Never exceed the (sublane-aligned) row extent of the array.
    if n >= min_sub:
        tile = min(tile, (n // min_sub) * min_sub)
    return int(max(min_sub, tile))


@functools.partial(jax.jit, static_argnames=("tile_n",))
def scalar_adain(patch_features, style_mean, style_std, *, tile_n=None):
    """Apply scalar AdaIN to patch_features [N, D] with scalar style stats."""
    n, d = patch_features.shape
    dtype = patch_features.dtype
    itemsize = jnp.dtype(dtype).itemsize

    if tile_n is None:
        tile_n = _choose_tile_n(n, d, dtype)
    else:
        tile_n = _round_up(int(tile_n), _min_sublane(dtype))

    style = jnp.stack(
        [jnp.asarray(style_mean, jnp.float32), jnp.asarray(style_std, jnp.float32)]
    )  # (2,)

    grid = (pl.cdiv(n, tile_n),)  # ragged trailing block handled by Pallas

    out = pl.pallas_call(
        _adain_kernel,
        out_shape=jax.ShapeDtypeStruct((n, d), dtype),
        grid=grid,
        in_specs=[
            pl.BlockSpec(memory_space=pltpu.MemorySpace.SMEM),  # style scalars
            pl.BlockSpec((tile_n, d), lambda i: (i, 0)),        # patch tile
        ],
        out_specs=pl.BlockSpec((tile_n, d), lambda i: (i, 0)),
        compiler_params=pltpu.CompilerParams(
            dimension_semantics=("parallel",),
            vmem_limit_bytes=48 * 1024 * 1024,
        ),
        cost_estimate=pl.CostEstimate(
            flops=int(8 * n * d),
            transcendentals=int(n),
            bytes_accessed=int(2 * n * d * itemsize),
        ),
    )(style, patch_features)

    return out


def pseudo_bag_style_transfer(patch_features, pseudo_styles, key):
    """Randomly pick one pseudo style (mean, std) and apply scalar AdaIN.

    patch_features: [N, D]
    pseudo_styles:  [K, 2], each row (mean, std)
    """
    K = pseudo_styles.shape[0]
    # torch.randint(0, K, (1,)).item() analogue — deterministic via PRNG key.
    k = jax.random.randint(key, (), 0, K)
    style_row = jax.lax.dynamic_slice(pseudo_styles, (k, 0), (1, 2)).reshape(2)
    return scalar_adain(patch_features, style_row[0], style_row[1])


def _reference(patch_features, style_mean, style_std):
    # Pure-JAX reference with torch semantics: unbiased std, eps added to std.
    x = patch_features.astype(jnp.float32)
    d = x.shape[1]
    mean = jnp.mean(x, axis=1, keepdims=True)
    centered = x - mean
    std = jnp.sqrt(jnp.sum(centered**2, axis=1, keepdims=True) / (d - 1)) + EPS
    return (centered / std) * style_std + style_mean


if __name__ == "__main__":
    key = jax.random.PRNGKey(0)
    k_feat, k_style, k_pick = jax.random.split(key, 3)

    # Small shapes consistent with the module's forward: N patches x D features.
    N, D, K = 16, 128, 4
    patch_features = jax.random.normal(k_feat, (N, D), dtype=jnp.float32)
    # Each pseudo style row: (mean, std); keep std positive.
    means = jax.random.normal(k_style, (K,), dtype=jnp.float32)
    stds = jnp.abs(jax.random.normal(jax.random.fold_in(k_style, 1), (K,))) + 0.5
    pseudo_styles = jnp.stack([means, stds], axis=1)  # [K, 2]

    out = pseudo_bag_style_transfer(patch_features, pseudo_styles, k_pick)
    out = jax.block_until_ready(out)

    # Correctness vs. a pure-JAX reference with the same chosen style.
    k = jax.random.randint(k_pick, (), 0, K)
    ref = _reference(patch_features, pseudo_styles[k, 0], pseudo_styles[k, 1])
    assert out.shape == (N, D)
    assert jnp.allclose(out, ref, atol=1e-3, rtol=1e-3), "mismatch vs reference"

    # Ragged-N case (N not a multiple of the tile) exercises the masked tail.
    N2 = 20
    pf2 = jax.random.normal(jax.random.fold_in(k_feat, 7), (N2, D), dtype=jnp.float32)
    out2 = jax.block_until_ready(scalar_adain(pf2, pseudo_styles[0, 0], pseudo_styles[0, 1]))
    ref2 = _reference(pf2, pseudo_styles[0, 0], pseudo_styles[0, 1])
    assert out2.shape == (N2, D)
    assert jnp.allclose(out2, ref2, atol=1e-3, rtol=1e-3), "ragged mismatch vs reference"

    print("KERNEL_OK")
</pallas_src>

<mosaic_0001>
module attributes {stable_mosaic.version = 11 : i64} {
  func.func @_adain_kernel(%arg0: i32, %arg1: memref<2xf32, #tpu.memory_space<smem>>, %arg2: memref<16x128xf32, #tpu.memory_space<vmem>>, %arg3: memref<16x128xf32, #tpu.memory_space<vmem>>) attributes {dimension_semantics = [#tpu.dimension_semantics<parallel>], iteration_bounds = array<i64: 1>, scalar_prefetch = 0 : i64, scratch_operands = 0 : i64, tpu.core_type = #tpu.core_type<tc>, window_params = [{transform_indices = @transform_0, window_bounds = array<i64: 2>}, {transform_indices = @transform_1, window_bounds = array<i64: 16, 128>}, {transform_indices = @transform_2, window_bounds = array<i64: 16, 128>}]} {
    %c0 = arith.constant 0 : index
    %0 = memref.load %arg1[%c0] : memref<2xf32, #tpu.memory_space<smem>>
    %c1 = arith.constant 1 : index
    %1 = memref.load %arg1[%c1] : memref<2xf32, #tpu.memory_space<smem>>
    %c0_0 = arith.constant 0 : index
    %c0_1 = arith.constant 0 : index
    %2 = vector.load %arg2[%c0_0, %c0_1] : memref<16x128xf32, #tpu.memory_space<vmem>>, vector<16x128xf32>
    %cst = arith.constant dense<0.000000e+00> : vector<16xf32>
    %3 = vector.multi_reduction <add>, %2, %cst [1] : vector<16x128xf32> to vector<16xf32>
    %4 = vector.shape_cast %3 : vector<16xf32> to vector<16x1xf32>
    %cst_2 = arith.constant 7.812500e-03 : f32
    %5 = vector.broadcast %cst_2 : f32 to vector<16x1xf32>
    %6 = arith.mulf %4, %5 : vector<16x1xf32>
    %7 = vector.broadcast %6 : vector<16x1xf32> to vector<16x128xf32>
    %8 = arith.subf %2, %7 : vector<16x128xf32>
    %9 = arith.mulf %8, %8 : vector<16x128xf32>
    %cst_3 = arith.constant dense<0.000000e+00> : vector<16xf32>
    %10 = vector.multi_reduction <add>, %9, %cst_3 [1] : vector<16x128xf32> to vector<16xf32>
    %11 = vector.shape_cast %10 : vector<16xf32> to vector<16x1xf32>
    %cst_4 = arith.constant 0.00787401571 : f32
    %12 = vector.broadcast %cst_4 : f32 to vector<16x1xf32>
    %13 = arith.mulf %11, %12 : vector<16x1xf32>
    %14 = math.sqrt %13 : vector<16x1xf32>
    %cst_5 = arith.constant 9.99999974E-6 : f32
    %15 = vector.broadcast %cst_5 : f32 to vector<16x1xf32>
    %16 = arith.addf %14, %15 : vector<16x1xf32>
    %17 = vector.broadcast %1 : f32 to vector<16x1xf32>
    %18 = arith.divf %17, %16 : vector<16x1xf32>
    %19 = vector.broadcast %18 : vector<16x1xf32> to vector<16x128xf32>
    %20 = arith.mulf %8, %19 : vector<16x128xf32>
    %21 = vector.broadcast %0 : f32 to vector<16x128xf32>
    %22 = arith.addf %20, %21 : vector<16x128xf32>
    %c0_6 = arith.constant 0 : index
    %c0_7 = arith.constant 0 : index
    %23 = vector.load %arg3[%c0_6, %c0_7] : memref<16x128xf32, #tpu.memory_space<vmem>>, vector<16x128xf32>
    tpu.vector_store %arg3[%c0_6, %c0_7], %22 {strides = array<i32>} : memref<16x128xf32, #tpu.memory_space<vmem>>, vector<16x128xf32>,
    return
  }
  func.func @transform_0(%arg0: i32) -> i32 {
    %c0_i32 = arith.constant 0 : i32
    %c0_i32_0 = arith.constant 0 : i32
    return %c0_i32 : i32
  }
  func.func @transform_1(%arg0: i32) -> (i32, i32) {
    %c0_i32 = arith.constant 0 : i32
    %c0_i32_0 = arith.constant 0 : i32
    return %arg0, %c0_i32 : i32, i32
  }
  func.func @transform_2(%arg0: i32) -> (i32, i32) {
    %c0_i32 = arith.constant 0 : i32
    %c0_i32_0 = arith.constant 0 : i32
    return %arg0, %c0_i32 : i32, i32
  }
}

</mosaic_0001>

<bundles_post_ra>
// kernel: scalar_adain.1
= control target key start
LH: loop header
LB: loop body
LE: loop exit
PB: predicated region body
PF: predicated region fallthrough
CT: control target
= control target key end

     0   :  { %7 = vsyncpa [#allocation5], 0  ;;  %s212_s0 = inlined_call_operand.vmem [shape: f32[2], index: 0, kind: input, shape index: {}]   ;;  %s213_s1 = inlined_call_operand.hbm [shape: f32[16,128], index: 1, kind: input, shape index: {}]   ;;  %s214_s2 = inlined_call_operand.hbm [shape: f32[16,128], index: 2, kind: output, shape index: {}]  }
   0x1   :  { %8 = vsyncpa [#allocation3], 0 }
   0x2   :  { %9 = vsyncpa [#allocation4], 0  ;;  %s16_s11 = sshll.u32 %s212_s0, 4  ;;  %s17_s11 = int_to_ptr.vmem [resolvable:$true] %s16_s11 }
   0x3   :  { %s119_s12 = scalar_lea.vmem %s17_s11, 16  ;;  %p124_p1 = scmp.lt.s32.totalorder %s17_s11, %s17_s11 }
   0x4   :  { %p120_p0 = scmp.ne.s32.totalorder %s17_s11, %s119_s12  ;;  %p125_p2 = scmp.lt.s32.totalorder %s119_s12, %s119_s12 }
   0x6   :  { %p126_p3 = por %p125_p2, %p124_p1 }
   0x8   :  { %p127_p4 = pnand %p126_p3, %p120_p0 }
   0xa   :  { %130 = shalt.err (!%p127_p4)
}
   0xb   :  { %s177_s13 = smov [#allocation2]   ;;  %s178_s14 = smov [#allocation6]  }
   0xc   :  { %19 = dma.vmem_to_smem %s17_s11, 16, %s177_s13, [#allocation5]  }
   0xd   :  { %s25_s15 = sshll.u32 %s178_s14, 4  ;;  %s26_s15 = int_to_ptr.vmem [resolvable:$true] %s25_s15 }
   0xe   :  { %s139_s16 = scalar_lea.vmem %s26_s15, 256  ;;  %p144_p6 = scmp.lt.s32.totalorder %s26_s15, %s26_s15 }
   0xf   :  { %p140_p5 = scmp.ne.s32.totalorder %s26_s15, %s139_s16  ;;  %p145_p7 = scmp.lt.s32.totalorder %s139_s16, %s139_s16 }
  0x11   :  { %p146_p8 = por %p145_p7, %p144_p6 }
  0x13   :  { %p147_p9 = pnand %p146_p8, %p140_p5 }
  0x15   :  { %150 = shalt.err (!%p147_p9)
}
  0x16   :  { %s179_s0 = smov 128   ;;  %s180_s17 = smov 8  }
  0x17   :  { %31 = dma.hbm_to_vmem [thread:$0]  %s213_s1, 256, %s26_s15, [#allocation3], %s179_s0, %s179_s0, %s180_s17  }
  0x18   :  { %171 = dma.done.wait [#allocation5], 16  }
  0x19   :  { %172 = vsyncadd [#allocation5], 4294967280 }
  0x1a   :  { %173 = dma.done.wait [#allocation3], 256  }
  0x1b   :  { %174 = vsyncadd [#allocation3], 4294967040 }
  0x1c   :  { %38 = sfence }
  0x1d   :  { %v41_v0 = vld [vmem:[#allocation6] sm:$0xff]  ;;  %v42_v1 = vld [vmem:[#allocation6 + $0x8] sm:$0xff]  ;;  %s105_s1 = sld [smem:[#allocation2 + $0x1]]  ;;  %s181_s21 = smov [#allocation7]  }
  0x1e   :  { %43 = vadd.xlane.f32.xlu0 %v41_v0  ;;  %s39_s20 = sld [smem:[#allocation2]]  ;;  %s92_s22 = sshll.u32 %s181_s21, 4  ;;  %s93_s22 = int_to_ptr.vmem [resolvable:$true] %s92_s22 }
  0x1f   :  { %s151_s23 = scalar_lea.vmem %s93_s22, 256  ;;  %p156_p11 = scmp.lt.s32.totalorder %s93_s22, %s93_s22 }
  0x20   :  { %p152_p10 = scmp.ne.s32.totalorder %s93_s22, %s151_s23  ;;  %p157_p12 = scmp.lt.s32.totalorder %s151_s23, %s151_s23 }
  0x22   :  { %45 = vadd.xlane.f32.xlu0 %v42_v1  ;;  %p158_p13 = por %p157_p12, %p156_p11 }
  0x23   :  { %v75_v26 = vstv %s105_s1 }
  0x24   :  { %v82_v29 = vstv %s39_s20  ;;  %p159_p0 = pnand %p158_p13, %p152_p10 }
  0xa7   :  { %v44_v2 = vpop.xlane.xlu0 %43 }
  0xa8   :  { %v47_v3 = vmul.f32 0.0078125, %v44_v2 }
  0xaa   :  { %v49_v4 = vsub.f32 %v41_v0, %v47_v3 }
  0xab   :  { %v46_v5 = vpop.xlane.xlu0 %45 }
  0xac   :  { %v48_v6 = vmul.f32 0.0078125, %v46_v5  ;;  %v51_v7 = vmul.f32 %v49_v4, %v49_v4 }
  0xae   :  { %v50_v8 = vsub.f32 %v42_v1, %v48_v6  ;;  %53 = vadd.xlane.f32.xlu1 %v51_v7 }
  0xb0   :  { %v52_v9 = vmul.f32 %v50_v8, %v50_v8 }
  0xb2   :  { %55 = vadd.xlane.f32.xlu1 %v52_v9 }
 0x137   :  { %v54_v10 = vpop.xlane.xlu1 %53 }
 0x138   :  { %v57_v11 = vmul.f32 0.007874016, %v54_v10 }
 0x13a   :  { %111 = vrsqrt.f32 %v57_v11  ;;  %vm61_vm0 = vcmp.eq.f32.partialorder %v57_v11, inf  ;;  %v64_v16 = vand.u32 2147483648, %v57_v11  ;;  %vm63_vm1 = vcmp.eq.f32.partialorder %v57_v11, 0.0 }
 0x13b   :  { %v56_v12 = vpop.xlane.xlu1 %55 }
 0x13c   :  { %v58_v13 = vmul.f32 0.007874016, %v56_v12 }
 0x13e   :  { %113 = vrsqrt.f32 %v58_v13  ;;  %vm68_vm2 = vcmp.eq.f32.partialorder %v58_v13, inf  ;;  %v71_v22 = vand.u32 2147483648, %v58_v13  ;;  %vm70_vm3 = vcmp.eq.f32.partialorder %v58_v13, 0.0 }
 0x147   :  { %v112_v14 = vpop.eup %111 }
 0x148   :  { %v60_v15 = vmul.f32 %v112_v14, %v57_v11 }
 0x14a   :  { %v62_v17 = vsel %vm61_vm0, %v57_v11, %v60_v15 }
 0x14b   :  { %v114_v18 = vpop.eup %113  ;;  %v65_v19 = vsel %vm63_vm1, %v64_v16, %v62_v17 }
 0x14c   :  { %v67_v20 = vmul.f32 %v114_v18, %v58_v13  ;;  %v73_v21 = vadd.f32 1e-05, %v65_v19 }
 0x14e   :  { %v69_v23 = vsel %vm68_vm2, %v58_v13, %v67_v20  ;;  %115 = vrcp.f32 %v73_v21 }
 0x14f   :  { %v72_v24 = vsel %vm70_vm3, %v71_v22, %v69_v23 }
 0x150   :  { %v74_v25 = vadd.f32 1e-05, %v72_v24 }
 0x152   :  { %117 = vrcp.f32 %v74_v25 }
 0x15b   :  { %v116_v27 = vpop.eup %115 }
 0x15c   :  { %v77_v28 = vmul.f32 %v116_v27, %v75_v26 }
 0x15e   :  { %v80_v30 = vmul.f32 %v77_v28, %v49_v4 }
 0x15f   :  { %v118_v31 = vpop.eup %117 }
 0x160   :  { %v79_v32 = vmul.f32 %v118_v31, %v75_v26  ;;  %v83_v33 = vadd.f32 %v82_v29, %v80_v30 }
 0x162   :  { %v81_v34 = vmul.f32 %v79_v32, %v50_v8  ;;  %85 = vst [vmem:[#allocation7] sm:$0xff] %v83_v33 }
 0x164   :  { %v84_v35 = vadd.f32 %v82_v29, %v81_v34 }
 0x166   :  { %86 = vst [vmem:[#allocation7 + $0x8] sm:$0xff] %v84_v35 }
 0x167   :  { %162 = shalt.err (!%p159_p0)
}
 0x168   :  { %98 = dma.vmem_to_hbm [thread:$0]  %s93_s22, 256, %s214_s2, [#allocation4], %s179_s0, %s179_s0, %s180_s17  }
 0x169   :  { %175 = dma.done.wait [#allocation4], 256  }
 0x16a   :  { %176 = vsyncadd [#allocation4], 4294967040 }
 0x16b   :  { %102 = vsyncpa [#allocation3], 1 }
 0x16c   :  { %103 = vsyncpa [#allocation4], 1 }
 0x16d   :  { %104 = vsyncpa [#allocation5], 1 }

</bundles_post_ra>
